<compile_context>
chip_gen: v5e
topology: v5e:2x2
jax: 0.10.0
libtpu: 0.0.40
codegen_flags: <defaults>
</compile_context>

<pallas_src>
import functools

import jax
import jax.numpy as jnp
from jax.experimental import pallas as pl
from jax.experimental.pallas import tpu as pltpu


# ----------------------------------------------------------------------------
# Pallas kernel: one dot + bias + LeakyReLU(0.2)
# ----------------------------------------------------------------------------
def _conv_leaky_kernel(p_ref, w_ref, b_ref, o_ref, *, negative_slope):
    # p_ref: (1, K, M)      f32  im2col patches of one image (K = kH*kW*C_in)
    # w_ref: (C_out, K)     f32  weights, contraction-ready
    # b_ref: (C_out, 1)     f32
    # o_ref: (1, C_out, M)  f32  NCHW-flattened output (M = H_out*W_out)
    patches = p_ref[0]                                        # (K, M)
    acc = jnp.dot(w_ref[...], patches,
                  preferred_element_type=jnp.float32)         # (C_out, M)
    acc = acc + b_ref[...]                                    # bias over lanes
    acc = jnp.where(acc >= 0.0, acc, negative_slope * acc)    # LeakyReLU(0.2)
    o_ref[0] = acc.astype(o_ref.dtype)


# ----------------------------------------------------------------------------
# Wrapper (keeps PyTorch NCHW / OIHW layouts)
# ----------------------------------------------------------------------------
@functools.partial(jax.jit, static_argnames=("ksize", "stride", "pad"))
def conv_leaky_forward(x_nchw, weight, bias, *, ksize, stride, pad):
    """x_nchw: (N, C_in, H, W), weight: (C_out, C_in, kH, kW), bias: (C_out,)."""
    n, c_in, h, w = x_nchw.shape
    c_out = weight.shape[0]
    h_out = (h + 2 * pad - ksize) // stride + 1
    w_out = (w + 2 * pad - ksize) // stride + 1
    k_dim = ksize * ksize * c_in
    m_dim = h_out * w_out

    # ---- wrapper-side im2col (fuses in XLA; handles stride>1 outside Mosaic)
    x_pad = jnp.pad(x_nchw, ((0, 0), (0, 0), (pad, pad), (pad, pad)))
    taps = []
    for ki in range(ksize):
        for kj in range(ksize):
            t = jax.lax.slice(
                x_pad,
                (0, 0, ki, kj),
                (n, c_in,
                 ki + (h_out - 1) * stride + 1,
                 kj + (w_out - 1) * stride + 1),
                (1, 1, stride, stride))                # (N, C_in, H_out, W_out)
            taps.append(t)
    # K index = (ki*ksize + kj)*c_in + c   (matches weight reshape below)
    patches = jnp.concatenate(taps, axis=1)            # (N, K, H_out, W_out)
    patches = patches.reshape(n, k_dim, m_dim).astype(jnp.float32)

    # weight (C_out, C_in, kH, kW) -> (C_out, kH, kW, C_in) -> (C_out, K)
    w_mat = jnp.transpose(weight, (0, 2, 3, 1)).reshape(c_out, k_dim)
    w_mat = w_mat.astype(jnp.float32)
    b_mat = bias.reshape(c_out, 1).astype(jnp.float32)

    kernel = functools.partial(_conv_leaky_kernel, negative_slope=0.2)

    flops = 2 * n * m_dim * k_dim * c_out
    bytes_accessed = 4 * (n * k_dim * m_dim + c_out * k_dim + c_out
                          + n * c_out * m_dim)

    out = pl.pallas_call(
        kernel,
        out_shape=jax.ShapeDtypeStruct((n, c_out, m_dim), jnp.float32),
        grid_spec=pltpu.PrefetchScalarGridSpec(
            num_scalar_prefetch=0,
            grid=(n,),
            in_specs=[
                pl.BlockSpec((1, k_dim, m_dim), lambda i: (i, 0, 0)),
                pl.BlockSpec((c_out, k_dim), lambda i: (0, 0)),   # resident
                pl.BlockSpec((c_out, 1), lambda i: (0, 0)),       # resident
            ],
            out_specs=pl.BlockSpec((1, c_out, m_dim), lambda i: (i, 0, 0)),
        ),
        compiler_params=pltpu.CompilerParams(
            dimension_semantics=("parallel",),
        ),
        cost_estimate=pl.CostEstimate(
            flops=flops, transcendentals=0, bytes_accessed=bytes_accessed),
    )(patches, w_mat, b_mat)

    # (N, C_out, M) is already NCHW modulo a free reshape.
    return out.reshape(n, c_out, h_out, w_out)


# ----------------------------------------------------------------------------
# Pure-JAX reference (for correctness checking)
# ----------------------------------------------------------------------------
def conv_leaky_reference(x_nchw, weight, bias, *, stride, pad):
    y = jax.lax.conv_general_dilated(
        x_nchw, weight,
        window_strides=(stride, stride),
        padding=((pad, pad), (pad, pad)),
        dimension_numbers=("NCHW", "OIHW", "NCHW"),
        precision=jax.lax.Precision.HIGHEST,
    )
    y = y + bias.reshape(1, -1, 1, 1)
    return jnp.where(y >= 0.0, y, 0.2 * y)


if __name__ == "__main__":
    # conv_config = (in_channels, out_channels, kernel_size, stride, padding)
    conv_config = (4, 8, 3, 1, 1)
    c_in, c_out, ksize, stride, pad = conv_config

    key = jax.random.PRNGKey(0)
    kx, kw, kb = jax.random.split(key, 3)

    # PyTorch-like init: uniform(-bound, bound), bound = 1/sqrt(fan_in)
    fan_in = c_in * ksize * ksize
    bound = 1.0 / (fan_in ** 0.5)
    x = jax.random.normal(kx, (2, c_in, 16, 16), dtype=jnp.float32)
    weight = jax.random.uniform(kw, (c_out, c_in, ksize, ksize),
                                minval=-bound, maxval=bound, dtype=jnp.float32)
    bias = jax.random.uniform(kb, (c_out,), minval=-bound, maxval=bound,
                              dtype=jnp.float32)

    y = conv_leaky_forward(x, weight, bias, ksize=ksize, stride=stride, pad=pad)
    y = jax.block_until_ready(y)

    y_ref = conv_leaky_reference(x, weight, bias, stride=stride, pad=pad)
    assert y.shape == y_ref.shape == (2, c_out, 16, 16)
    # MXU matmul precision may round operands to bf16 -> modest tolerance.
    assert jnp.allclose(y, y_ref, atol=2e-2, rtol=2e-2)

    print("KERNEL_OK")
</pallas_src>

<mosaic_0001>
module attributes {stable_mosaic.version = 11 : i64} {
  func.func @_conv_leaky_kernel(%arg0: i32, %arg1: memref<1x36x256xf32, #tpu.memory_space<vmem>>, %arg2: memref<8x36xf32, #tpu.memory_space<vmem>>, %arg3: memref<8x1xf32, #tpu.memory_space<vmem>>, %arg4: memref<1x8x256xf32, #tpu.memory_space<vmem>>) attributes {dimension_semantics = [#tpu.dimension_semantics<parallel>], iteration_bounds = array<i64: 2>, scalar_prefetch = 0 : i64, scratch_operands = 0 : i64, tpu.core_type = #tpu.core_type<tc>, window_params = [{transform_indices = @transform_0, window_bounds = array<i64: 1, 36, 256>}, {pipeline_mode = #tpu.pipeline_mode<synchronous>, transform_indices = @transform_1, window_bounds = array<i64: 8, 36>}, {pipeline_mode = #tpu.pipeline_mode<synchronous>, transform_indices = @transform_2, window_bounds = array<i64: 8, 1>}, {transform_indices = @transform_3, window_bounds = array<i64: 1, 8, 256>}]} {
    %c0 = arith.constant 0 : index
    %c0_0 = arith.constant 0 : index
    %c0_1 = arith.constant 0 : index
    %0 = vector.load %arg1[%c0, %c0_0, %c0_1] : memref<1x36x256xf32, #tpu.memory_space<vmem>>, vector<1x36x256xf32>
    %1 = vector.shape_cast %0 : vector<1x36x256xf32> to vector<36x256xf32>
    %c0_2 = arith.constant 0 : index
    %c0_3 = arith.constant 0 : index
    %2 = vector.load %arg2[%c0_2, %c0_3] : memref<8x36xf32, #tpu.memory_space<vmem>>, vector<8x36xf32>
    %cst = arith.constant dense<0.000000e+00> : vector<8x256xf32>
    %3 = tpu.matmul %2, %1, %cst {dimension_numbers = #tpu.dot_dimension_numbers<[1], [0], [0], [1], [0, 0, 1, 1], [], []>} : vector<8x36xf32>, vector<36x256xf32>, vector<8x256xf32> -> vector<8x256xf32>
    %c0_4 = arith.constant 0 : index
    %c0_5 = arith.constant 0 : index
    %4 = vector.load %arg3[%c0_4, %c0_5] : memref<8x1xf32, #tpu.memory_space<vmem>>, vector<8x1xf32>
    %5 = vector.broadcast %4 : vector<8x1xf32> to vector<8x256xf32>
    %6 = arith.addf %3, %5 : vector<8x256xf32>
    %cst_6 = arith.constant 0.000000e+00 : f32
    %7 = vector.broadcast %cst_6 : f32 to vector<8x256xf32>
    %8 = arith.cmpf oge, %6, %7 : vector<8x256xf32>
    %cst_7 = arith.constant 2.000000e-01 : f32
    %9 = vector.broadcast %cst_7 : f32 to vector<8x256xf32>
    %10 = arith.mulf %9, %6 : vector<8x256xf32>
    %11 = arith.select %8, %6, %10 : vector<8x256xi1>, vector<8x256xf32>
    %c0_8 = arith.constant 0 : index
    %c0_9 = arith.constant 0 : index
    %c0_10 = arith.constant 0 : index
    %12 = vector.load %arg4[%c0_8, %c0_9, %c0_10] : memref<1x8x256xf32, #tpu.memory_space<vmem>>, vector<1x8x256xf32>
    %13 = vector.shape_cast %12 : vector<1x8x256xf32> to vector<8x256xf32>
    %14 = vector.shape_cast %11 : vector<8x256xf32> to vector<1x8x256xf32>
    tpu.vector_store %arg4[%c0_8, %c0_9, %c0_10], %14 {strides = array<i32>} : memref<1x8x256xf32, #tpu.memory_space<vmem>>, vector<1x8x256xf32>,
    return
  }
  func.func @transform_0(%arg0: i32) -> (i32, i32, i32) {
    %c0_i32 = arith.constant 0 : i32
    %c0_i32_0 = arith.constant 0 : i32
    %c0_i32_1 = arith.constant 0 : i32
    return %arg0, %c0_i32, %c0_i32_0 : i32, i32, i32
  }
  func.func @transform_1(%arg0: i32) -> (i32, i32) {
    %c0_i32 = arith.constant 0 : i32
    %c0_i32_0 = arith.constant 0 : i32
    %c0_i32_1 = arith.constant 0 : i32
    return %c0_i32, %c0_i32_0 : i32, i32
  }
  func.func @transform_2(%arg0: i32) -> (i32, i32) {
    %c0_i32 = arith.constant 0 : i32
    %c0_i32_0 = arith.constant 0 : i32
    %c0_i32_1 = arith.constant 0 : i32
    return %c0_i32, %c0_i32_0 : i32, i32
  }
  func.func @transform_3(%arg0: i32) -> (i32, i32, i32) {
    %c0_i32 = arith.constant 0 : i32
    %c0_i32_0 = arith.constant 0 : i32
    %c0_i32_1 = arith.constant 0 : i32
    return %arg0, %c0_i32, %c0_i32_0 : i32, i32, i32
  }
}

</mosaic_0001>

<bundles_post_ra>
// kernel: conv_leaky_forward.1
= control target key start
LH: loop header
LB: loop body
LE: loop exit
PB: predicated region body
PF: predicated region fallthrough
CT: control target
= control target key end

     0   :  { %s357_s12 = smov 0   ;;  %s384_s0 = inlined_call_operand.vmem [shape: f32[2,36,256], index: 0, kind: input, shape index: {}]   ;;  %s385_s1 = inlined_call_operand.vmem [shape: f32[8,36], index: 1, kind: input, shape index: {}]   ;;  %s386_s2 = inlined_call_operand.vmem [shape: f32[8,1], index: 2, kind: input, shape index: {}]   ;;  %s387_s3 = inlined_call_operand.vmem [shape: f32[2,8,256], index: 3, kind: output, shape index: {}]  }
   0x1 LB: > { %s302_s13 = sadd.s32 4294967295, %s334_s12   ;;  %p306_p0 = scmp.ge.s32.totalorder %s334_s12, 1  ;;  %s334_s12 = sphi %s357_s12, %s13_s12  }
   0x2   : > { %p137_p1 = scmp.lt.s32.totalorder %s334_s12, 3 }
   0x4   : > { %p138_p2 = pnand %p306_p0, %p137_p1 }
   0x5   : > { %p161_p3 = scmp.lt.s32.totalorder (!%p138_p2), %s302_s13, 1 }
   0x6   : > { %141 = sbr.rel (%p138_p2) target bundleno = 158 (0x9e), region = 32 }
   0xb   : > { %v182_v0 = vld [vmem:[%s386_s2] sm:$0xff]  ;;  %v336_v1 = vmov 0   ;;  %s389_s13 = smov (!%p161_p3, %s302_s13), 1  ;;  %vm192_vm0 = vcmask 1043456   ;;  %vm188_vm1 = vcmask 293888  }
   0xc   : > { %327 = vset.pattern.permute.xlu0 %v336_v1  ;;  %s317_s16 = smul.u32 80, %s389_s13  ;;  %v181_v12 = vld [vmem:[%s385_s1] sm:$0xff]  ;;  %s316_s22 = sshll.u32 %s389_s13, 4 }
   0xd   : > { %185 = vperm.xlu0 %327, %v182_v0   ;;  %s170_s25 = scalar_lea.vmem %s387_s3, %s316_s22 }
   0xe   : > { %s165_s19 = scalar_lea.vmem %s384_s0, %s317_s16 }
   0xf   : > { %v179_v2 = vld [vmem:[%s165_s19 + $0x40] sm:$0xf]  ;;  %v180_v3 = vld [vmem:[%s165_s19 + $0x48] sm:$0xf]  ;;  %v177_v4 = vld [vmem:[%s165_s19 + $0x30] sm:$0xff] }
  0x10   : > { %310 = vmatpush.msk.msra.mxu0 %vm192_vm0, %v179_v2  ;;  %312 = vmatpush.msk.msra.mxu1 %vm192_vm0, %v180_v3  ;;  %v178_v5 = vld [vmem:[%s165_s19 + $0x38] sm:$0xff]  ;;  %v175_v6 = vld [vmem:[%s165_s19 + $0x20] sm:$0xff]  ;;  %v176_v7 = vld [vmem:[%s165_s19 + $0x28] sm:$0xff] }
  0x11   : > { %v173_v8 = vld [vmem:[%s165_s19 + $0x10] sm:$0xff]  ;;  %v174_v9 = vld [vmem:[%s165_s19 + $0x18] sm:$0xff]  ;;  %v171_v10 = vld [vmem:[%s165_s19] sm:$0xff] }
  0x12   : > { %211 = vmatpush.msra.mxu0 %v177_v4  ;;  %231 = vmatpush.msra.mxu1 %v178_v5  ;;  %v172_v11 = vld [vmem:[%s165_s19 + $0x8] sm:$0xff] }
  0x14   : > { %212 = vmatpush.msra.mxu0 %v175_v6  ;;  %232 = vmatpush.msra.mxu1 %v176_v7 }
  0x16   : > { %213 = vmatpush.msra.mxu0 %v173_v8  ;;  %233 = vmatpush.msra.mxu1 %v174_v9 }
  0x18   : > { %214 = vmatpush.msra.mxu0 %v171_v10  ;;  %234 = vmatpush.msra.mxu1 %v172_v11 }
  0x19   : > { %311 = vmatmul.msk.f32.vlgmr.msra.gmra.mxu0 %vm188_vm1, %v181_v12  ;;  %313 = vmatmul.msk.f32.vlgmr.msra.gmra.mxu1 %vm188_vm1, %v181_v12 }
  0x7f   : > { %v186_v13 = vpop.permute.xlu0 %185 }
  0x96   : > { %v216_v14 = vpop.f32.mrf.mxu0  ;;  %v236_v15 = vpop.f32.mrf.mxu1 }
  0x97   : > { %v217_v16 = vadd.f32 %v216_v14, %v186_v13  ;;  %v237_v17 = vadd.f32 %v236_v15, %v186_v13 }
  0x99   : > { %vm239_vm2 = vcmp.ge.f32.partialorder %v217_v16, 0.0  ;;  %v241_v18 = vmul.f32 0.2, %v217_v16  ;;  %vm240_vm3 = vcmp.ge.f32.partialorder %v237_v17, 0.0  ;;  %v242_v19 = vmul.f32 0.2, %v237_v17 }
  0x9b   : > { %v243_v20 = vsel %vm239_vm2, %v217_v16, %v241_v18  ;;  %v244_v21 = vsel %vm240_vm3, %v237_v17, %v242_v19 }
  0x9c   : > { %245 = vst [vmem:[%s170_s25] sm:$0xff] %v243_v20 }
  0x9d   : > { %246 = vst [vmem:[%s170_s25 + $0x8] sm:$0xff] %v244_v21 }
  0x9e PF: > { %s13_s12 = sadd.s32 1, %s334_s12  }
  0x9f   : > { %p10_p4 = scmp.ge.s32.totalorder %s13_s12, 4  }
  0xa1   :  { %12 = sbr.rel (!%p10_p4) target bundleno = 1 (0x1), region = 62 }

</bundles_post_ra>
